<compile_context>
chip_gen: v6e
topology: v6e:2x2x1
jax: 0.10.0
libtpu: 0.0.40
codegen_flags: <defaults>
</compile_context>

<pallas_src>
import functools

import jax
import jax.numpy as jnp
from jax import lax
from jax.experimental import pallas as pl
from jax.experimental.pallas import tpu as pltpu


def _label_smoothing_kernel(pred_ref, tgt_ref, out_ref, *, confidence, off_value):
    x = pred_ref[...].astype(jnp.float32)                 # (TB, C) in f32
    tb, c = x.shape
    tgt = tgt_ref[...]                                     # (TB, 1) int32

    # Smoothed one-hot weights (each row sums to exactly 1).
    cls_idx = lax.broadcasted_iota(jnp.int32, (tb, c), 1)
    w = jnp.where(cls_idx == tgt,
                  jnp.float32(confidence), jnp.float32(off_value))

    # log-sum-exp along the class (lane) axis.
    m = jnp.max(x, axis=-1, keepdims=True)
    lse = m + jnp.log(jnp.sum(jnp.exp(x - m), axis=-1, keepdims=True))

    # row_loss = -sum_c w_c * (x_c - lse) = lse - sum_c w_c * x_c
    wx = jnp.sum(w * x, axis=-1, keepdims=True)            # (TB, 1)
    out_ref[...] = lse - wx                                 # per-row losses


def _vmem_capacity_bytes():
    try:
        info = pltpu.get_tpu_info()
        cap = getattr(info, "vmem_capacity_bytes", None)
        if cap:
            return int(cap)
    except Exception:
        pass
    return 64 * 1024 * 1024       # conservative default (v7x per-TC VMEM)


def _pick_tile_b(n, c, itemsize):
    """Largest batch tile (multiple of 8, <= 2048) that fits the VMEM budget."""
    cap = _vmem_capacity_bytes()
    vmem_limit = min(int(cap * 0.85), 100 * 1024 * 1024)
    vmem_limit = max(vmem_limit, 32 * 1024 * 1024)
    budget = int(vmem_limit * 0.6)                         # leave pipeline slack
    c_pad = max(((c + 127) // 128) * 128, 128)             # lane padding in VMEM
    # double-buffered input + ~2 f32 temporaries per element + tgt/out pads
    bytes_per_row = c_pad * (2 * itemsize + 8) + 1024
    tile_b = budget // bytes_per_row
    tile_b = max(8, (tile_b // 8) * 8)
    tile_b = min(tile_b, 2048)
    tile_b = min(tile_b, max(8, ((n + 7) // 8) * 8))        # don't exceed batch
    return int(tile_b), int(vmem_limit)


def label_smoothing_loss(pred, target, *, classes, smoothing=0.0, tile_b=None):
    """pred: (N, C) float logits (f32 or bf16), target: (N,) int class ids."""
    n, c = pred.shape
    assert c == classes
    confidence = 1.0 - smoothing
    off_value = smoothing / (classes - 1)

    auto_tile, vmem_limit = _pick_tile_b(n, c, jnp.dtype(pred.dtype).itemsize)
    if tile_b is None:
        tile_b = auto_tile
    assert tile_b % 8 == 0, "tile_b must be a multiple of 8"

    # No input padding: the grid over-covers the batch axis; Pallas pads
    # boundary reads (garbage stays within its own rows) and drops
    # out-of-bounds boundary writes, so the (n, 1) output is exact.
    tgt2d = target.astype(jnp.int32).reshape(n, 1)
    grid = (pl.cdiv(n, tile_b),)

    kernel = functools.partial(
        _label_smoothing_kernel, confidence=confidence, off_value=off_value)

    row_losses = pl.pallas_call(
        kernel,
        out_shape=jax.ShapeDtypeStruct((n, 1), jnp.float32),
        grid_spec=pltpu.PrefetchScalarGridSpec(
            num_scalar_prefetch=0,
            grid=grid,
            in_specs=[
                pl.BlockSpec((tile_b, c), lambda i: (i, 0)),
                pl.BlockSpec((tile_b, 1), lambda i: (i, 0)),
            ],
            out_specs=pl.BlockSpec((tile_b, 1), lambda i: (i, 0)),
        ),
        compiler_params=pltpu.CompilerParams(
            dimension_semantics=("parallel",),
            vmem_limit_bytes=vmem_limit),
    )(pred, tgt2d)

    # Final mean over the real rows (output has exactly n rows).
    return jnp.sum(row_losses) / jnp.float32(n)


def _reference(pred, target, classes, smoothing):
    logp = jax.nn.log_softmax(pred.astype(jnp.float32), axis=-1)
    confidence = 1.0 - smoothing
    true_dist = jnp.full_like(logp, smoothing / (classes - 1))
    true_dist = true_dist.at[jnp.arange(pred.shape[0]), target].set(confidence)
    return jnp.mean(jnp.sum(-true_dist * logp, axis=-1))


if __name__ == "__main__":
    key = jax.random.PRNGKey(0)
    smoothing = 0.1

    # Case 1: tile-aligned batch.
    N, C = 16, 8
    k1, k2 = jax.random.split(key)
    pred = jax.random.normal(k1, (N, C), dtype=jnp.float32)
    target = jax.random.randint(k2, (N,), 0, C, dtype=jnp.int32)

    loss = label_smoothing_loss(pred, target, classes=C, smoothing=smoothing)
    loss = jax.block_until_ready(loss)
    ref = _reference(pred, target, C, smoothing)
    assert jnp.allclose(loss, ref, atol=1e-5, rtol=1e-5), (loss, ref)

    # Case 2: ragged batch (exercises the no-padding boundary-block path).
    Nr = 13
    k3, k4 = jax.random.split(k2)
    pred_r = jax.random.normal(k3, (Nr, C), dtype=jnp.float32)
    target_r = jax.random.randint(k4, (Nr,), 0, C, dtype=jnp.int32)

    loss_r = label_smoothing_loss(pred_r, target_r, classes=C, smoothing=smoothing)
    loss_r = jax.block_until_ready(loss_r)
    ref_r = _reference(pred_r, target_r, C, smoothing)
    assert jnp.allclose(loss_r, ref_r, atol=1e-5, rtol=1e-5), (loss_r, ref_r)

    print("KERNEL_OK")
</pallas_src>

<mosaic_0001>
module attributes {stable_mosaic.version = 11 : i64} {
  func.func @_label_smoothing_kernel(%arg0: i32, %arg1: memref<16x8xf32, #tpu.memory_space<vmem>>, %arg2: memref<16x1xi32, #tpu.memory_space<vmem>>, %arg3: memref<16x1xf32, #tpu.memory_space<vmem>>) attributes {dimension_semantics = [#tpu.dimension_semantics<parallel>], iteration_bounds = array<i64: 1>, scalar_prefetch = 0 : i64, scratch_operands = 0 : i64, tpu.core_type = #tpu.core_type<tc>, window_params = [{transform_indices = @transform_0, window_bounds = array<i64: 16, 8>}, {transform_indices = @transform_1, window_bounds = array<i64: 16, 1>}, {transform_indices = @transform_2, window_bounds = array<i64: 16, 1>}]} {
    %c0 = arith.constant 0 : index
    %c0_0 = arith.constant 0 : index
    %0 = vector.load %arg1[%c0, %c0_0] : memref<16x8xf32, #tpu.memory_space<vmem>>, vector<16x8xf32>
    %c0_1 = arith.constant 0 : index
    %c0_2 = arith.constant 0 : index
    %1 = vector.load %arg2[%c0_1, %c0_2] : memref<16x1xi32, #tpu.memory_space<vmem>>, vector<16x1xi32>
    %2 = tpu.iota {dimensions = array<i32: 1>} : vector<16x8xi32>
    %3 = vector.broadcast %1 : vector<16x1xi32> to vector<16x8xi32>
    %4 = arith.cmpi eq, %2, %3 : vector<16x8xi32>
    %cst = arith.constant 0.899999976 : f32
    %cst_3 = arith.constant 0.0142857144 : f32
    %5 = vector.broadcast %cst : f32 to vector<16x8xf32>
    %6 = vector.broadcast %cst_3 : f32 to vector<16x8xf32>
    %7 = arith.select %4, %5, %6 : vector<16x8xi1>, vector<16x8xf32>
    %cst_4 = arith.constant dense<0xFF800000> : vector<16xf32>
    %8 = vector.multi_reduction <maximumf>, %0, %cst_4 [1] : vector<16x8xf32> to vector<16xf32>
    %9 = vector.shape_cast %8 : vector<16xf32> to vector<16x1xf32>
    %10 = vector.broadcast %9 : vector<16x1xf32> to vector<16x8xf32>
    %11 = arith.subf %0, %10 : vector<16x8xf32>
    %12 = math.exp %11 : vector<16x8xf32>
    %cst_5 = arith.constant dense<0.000000e+00> : vector<16xf32>
    %13 = vector.multi_reduction <add>, %12, %cst_5 [1] : vector<16x8xf32> to vector<16xf32>
    %14 = vector.shape_cast %13 : vector<16xf32> to vector<16x1xf32>
    %15 = math.log %14 : vector<16x1xf32>
    %16 = arith.addf %9, %15 : vector<16x1xf32>
    %17 = arith.mulf %7, %0 : vector<16x8xf32>
    %cst_6 = arith.constant dense<0.000000e+00> : vector<16xf32>
    %18 = vector.multi_reduction <add>, %17, %cst_6 [1] : vector<16x8xf32> to vector<16xf32>
    %19 = vector.shape_cast %18 : vector<16xf32> to vector<16x1xf32>
    %20 = arith.subf %16, %19 : vector<16x1xf32>
    %c0_7 = arith.constant 0 : index
    %c0_8 = arith.constant 0 : index
    %21 = vector.load %arg3[%c0_7, %c0_8] : memref<16x1xf32, #tpu.memory_space<vmem>>, vector<16x1xf32>
    tpu.vector_store %arg3[%c0_7, %c0_8], %20 {strides = array<i32>} : memref<16x1xf32, #tpu.memory_space<vmem>>, vector<16x1xf32>,
    return
  }
  func.func @transform_0(%arg0: i32) -> (i32, i32) {
    %c0_i32 = arith.constant 0 : i32
    %c0_i32_0 = arith.constant 0 : i32
    return %arg0, %c0_i32 : i32, i32
  }
  func.func @transform_1(%arg0: i32) -> (i32, i32) {
    %c0_i32 = arith.constant 0 : i32
    %c0_i32_0 = arith.constant 0 : i32
    return %arg0, %c0_i32 : i32, i32
  }
  func.func @transform_2(%arg0: i32) -> (i32, i32) {
    %c0_i32 = arith.constant 0 : i32
    %c0_i32_0 = arith.constant 0 : i32
    return %arg0, %c0_i32 : i32, i32
  }
}

</mosaic_0001>

<bundles_post_ra>
// kernel: tpu_custom_call.1
= control target key start
LH: loop header
LB: loop body
LE: loop exit
PB: predicated region body
PF: predicated region fallthrough
CT: control target
= control target key end

     0   :  { %vm27_vm0 = vcmask 64512   ;;  %v81_v2 = vmov 0   ;;  %v15_v10 = vlaneseq  ;;  %v82_v17 = vmov 0.014285714   ;;  %s122_s0 = inlined_call_operand.vmem [shape: f32[16,8], index: 0, kind: input, shape index: {}]   ;;  %s123_s1 = inlined_call_operand.vmem [shape: s32[16,1], index: 1, kind: input, shape index: {}]   ;;  %s124_s2 = inlined_call_operand.vmem [shape: f32[16,1], index: 2, kind: output, shape index: {}]  }
   0x1   :  { %v11_v0 = vld [vmem:[%s122_s0] sm:$0xff]  ;;  %v12_v1 = vld [vmem:[%s122_s0 + $0x8] sm:$0xff]  ;;  %71 = vset.pattern.permute.xlu1 %v81_v2  ;;  %72 = vset.pattern.permute.xlu0 %v81_v2  ;;  %vm62_vm3 = vcmask 7168  }
   0x2   :  { %v13_v3 = vld [vmem:[%s123_s1] sm:$0xff]  ;;  %v28_v4 = vsel %vm27_vm0, %v11_v0, -inf  ;;  %v14_v5 = vld [vmem:[%s123_s1 + $0x8] sm:$0xff]  ;;  %v31_v6 = vsel %vm27_vm0, %v12_v1, -inf  ;;  %v16_v15 = vand.u32 127, %v15_v10 }
   0x3   :  { %18 = vperm.xlu1 %71, %v13_v3   ;;  %29 = vmax.xlane.f32.xlu0 %v28_v4 }
   0x7   :  { %21 = vperm.xlu1 %71, %v14_v5   ;;  %32 = vmax.xlane.f32.xlu0 %v31_v6 }
  0x7e   :  { %v19_v13 = vpop.permute.xlu1 %18 }
  0x7f   :  { %vm23_vm1 = vcmp.eq.s32.totalorder %v16_v15, %v19_v13 }
  0x80   :  { %v25_v18 = vsel %vm23_vm1, 0.9, %v82_v17 }
  0x81   :  { %v52_v19 = vmul.f32 %v25_v18, %v11_v0 }
  0x82   :  { %v22_v16 = vpop.permute.xlu1 %21 }
  0x83   :  { %vm24_vm2 = vcmp.eq.s32.totalorder %v16_v15, %v22_v16  ;;  %v54_v23 = vsel %vm27_vm0, %v52_v19, 0.0 }
  0x84   :  { %v26_v21 = vsel %vm24_vm2, 0.9, %v82_v17 }
  0x85   :  { %v53_v24 = vmul.f32 %v26_v21, %v12_v1 }
  0x87   :  { %v57_v27 = vsel %vm27_vm0, %v53_v24, 0.0 }
  0x8c   :  { %v30_v7 = vpop.xlane.xlu0 %29 }
  0x8d   :  { %v34_v8 = vsub.f32 %v11_v0, %v30_v7 }
  0x8f   :  { %v36_v9 = vmul.f32 1.442695, %v34_v8 }
  0x90   :  { %v33_v11 = vpop.xlane.xlu0 %32 }
  0x91   :  { %73 = vpow2.f32 %v36_v9  ;;  %v35_v12 = vsub.f32 %v12_v1, %v33_v11 }
  0x93   :  { %v38_v14 = vmul.f32 1.442695, %v35_v12 }
  0x95   :  { %75 = vpow2.f32 %v38_v14 }
  0x9e   :  { %v74_v20 = vpop.eup %73 }
  0x9f   :  { %v40_v22 = vsel %vm27_vm0, %v74_v20, 0.0 }
  0xa0   :  { %41 = vadd.xlane.f32.xlu0 %v40_v22 }
  0xa2   :  { %v76_v25 = vpop.eup %75 }
  0xa3   :  { %v43_v26 = vsel %vm27_vm0, %v76_v25, 0.0 }
  0xa4   :  { %44 = vadd.xlane.f32.xlu1 %v43_v26  ;;  %55 = vadd.xlane.f32.xlu0 %v54_v23 }
  0xa8   :  { %58 = vadd.xlane.f32.xlu0 %v57_v27 }
 0x129   :  { %v42_v28 = vpop.xlane.xlu0 %41 }
 0x12a   :  { %77 = vlog2.f32 %v42_v28 }
 0x12d   :  { %v45_v29 = vpop.xlane.xlu1 %44  ;;  %v56_v32 = vpop.xlane.xlu0 %55 }
 0x12e   :  { %79 = vlog2.f32 %v45_v29 }
 0x131   :  { %v59_v38 = vpop.xlane.xlu0 %58 }
 0x137   :  { %v78_v30 = vpop.eup %77 }
 0x138   :  { %v47_v31 = vmul.f32 0.6931472, %v78_v30 }
 0x13a   :  { %v50_v33 = vadd.f32 %v47_v31, %v30_v7 }
 0x13b   :  { %v80_v34 = vpop.eup %79 }
 0x13c   :  { %v49_v35 = vmul.f32 0.6931472, %v80_v34  ;;  %v60_v36 = vsub.f32 %v50_v33, %v56_v32 }
 0x13e   :  { %63 = vst.msk [vmem:[%s124_s2] sm:$0xff] %vm62_vm3, %v60_v36  ;;  %v51_v37 = vadd.f32 %v49_v35, %v33_v11 }
 0x140   :  { %v61_v39 = vsub.f32 %v51_v37, %v59_v38 }
 0x142   :  { %64 = vst.msk [vmem:[%s124_s2 + $0x8] sm:$0xff] %vm62_vm3, %v61_v39 }

</bundles_post_ra>
